<compile_context>
chip_gen: v7x
topology: tpu7x:2x2x1
jax: 0.10.0
libtpu: 0.0.40
codegen_flags: <defaults>
</compile_context>

<pallas_src>
import functools

import jax
import jax.numpy as jnp
from jax.experimental import pallas as pl
from jax.experimental.pallas import tpu as pltpu


def _rope_kernel(inv_ref, pos_ref, cos_ref, sin_ref, *, attention_scaling):
    # inv_ref:  (1, D)       float32  -- pre-duplicated [inv_freq, inv_freq]
    # pos_ref:  (R, tS, 1)   float32  -- positions as a sublane-major column
    # cos_ref:  (R, tS, D)   out dtype
    # sin_ref:  (R, tS, D)   out dtype
    inv = inv_ref[...]                    # (1, D)
    pos = pos_ref[...]                    # (R, tS, 1)

    # emb[r, s, d] = pos[r, s] * inv_full[d]  -> (R, tS, D)
    # (lane-broadcast of pos column x sublane-broadcast of inv row; no concat,
    #  no cross-lane relayout, every op lane-dense.)
    emb = pos * inv[None, :, :]

    cos = jnp.cos(emb)
    sin = jnp.sin(emb)
    if attention_scaling != 1.0:
        cos = cos * attention_scaling
        sin = sin * attention_scaling

    cos_ref[...] = cos.astype(cos_ref.dtype)
    sin_ref[...] = sin.astype(sin_ref.dtype)


def qwen2_5_vl_rotary_embedding(x, position_ids, inv_freq, attention_scaling=1.0,
                                *, rows_per_block=None, seq_block=None):
    """Pallas implementation of Qwen2_5_VLRotaryEmbedding.forward (default rope).

    x:            (B, S, hidden) — only its dtype is used (matching the torch module).
    position_ids: (3, B, S) int   (mrope sections: temporal / height / width)
    inv_freq:     (D/2,) float32
    returns (cos, sin): each (3, B, S, D) in x.dtype
    """
    three, B, S = position_ids.shape
    assert three == 3
    half = inv_freq.shape[0]
    D = 2 * half
    out_dtype = x.dtype
    n_rows = 3 * B

    # Positions sublane-major: (3*B, S, 1) column -> kernel gets (R, tS, 1).
    pos_col = position_ids.reshape(n_rows, S, 1).astype(jnp.float32)
    # Pre-duplicated inv_freq row (length D) so the kernel needs no concat.
    inv_full = jnp.concatenate([inv_freq, inv_freq]).reshape(1, D).astype(jnp.float32)

    # ---- Tile sizing -------------------------------------------------------
    # Keep 2 outputs x 2 pipeline buffers + f32 intermediates well inside the
    # 32 MiB scoped-VMEM budget (v7x has only 64 MiB physical).
    if rows_per_block is None:
        rows_per_block = min(8, n_rows)
    if seq_block is None:
        seq_block = min(S, 512)
        if seq_block != S:
            # (8, 128) rule: when not taking the full seq dim, tS must be a
            # multiple of 8.
            seq_block = max(8, (seq_block // 8) * 8)
    grid = (pl.cdiv(n_rows, rows_per_block), pl.cdiv(S, seq_block))

    kernel = functools.partial(_rope_kernel,
                               attention_scaling=float(attention_scaling))

    # TODO(synk): for head_dim < 128, fold k = 128 // D rows into the lane dim of
    # the output slab to get unmasked vst; real Qwen2.5-VL (D=128) is lane-dense.
    cos, sin = pl.pallas_call(
        kernel,
        out_shape=(
            jax.ShapeDtypeStruct((n_rows, S, D), out_dtype),
            jax.ShapeDtypeStruct((n_rows, S, D), out_dtype),
        ),
        grid_spec=pltpu.PrefetchScalarGridSpec(
            num_scalar_prefetch=0,
            grid=grid,
            in_specs=[
                # inv_freq is tiny and constant across the grid.
                pl.BlockSpec((1, D), lambda r, s: (0, 0)),
                pl.BlockSpec((rows_per_block, seq_block, 1),
                             lambda r, s: (r, s, 0)),
            ],
            out_specs=[
                pl.BlockSpec((rows_per_block, seq_block, D),
                             lambda r, s: (r, s, 0)),
                pl.BlockSpec((rows_per_block, seq_block, D),
                             lambda r, s: (r, s, 0)),
            ],
        ),
        compiler_params=pltpu.CompilerParams(
            dimension_semantics=("parallel", "parallel"),
            vmem_limit_bytes=32 * 1024 * 1024,
        ),
    )(inv_full, pos_col)

    return cos.reshape(3, B, S, D), sin.reshape(3, B, S, D)


def make_default_inv_freq(head_dim, rope_theta=10000.0):
    # ROPE_INIT_FUNCTIONS['default']: inv_freq = 1/theta^(2i/d), attention_scaling = 1.0
    exponent = jnp.arange(0, head_dim, 2, dtype=jnp.float32) / head_dim
    inv_freq = 1.0 / (rope_theta ** exponent)
    return inv_freq, 1.0


def _reference(x, position_ids, inv_freq, attention_scaling):
    # Pure-JAX reference mirroring the torch forward exactly.
    inv_exp = inv_freq[None, None, :, None].astype(jnp.float32)          # (1,1,half,1)
    inv_exp = jnp.broadcast_to(inv_exp, (3, position_ids.shape[1],
                                         inv_freq.shape[0], 1))
    pos_exp = position_ids[:, :, None, :].astype(jnp.float32)            # (3,B,1,S)
    freqs = jnp.matmul(inv_exp, pos_exp).transpose(0, 1, 3, 2)           # (3,B,S,half)
    emb = jnp.concatenate([freqs, freqs], axis=-1)                       # (3,B,S,D)
    cos = jnp.cos(emb) * attention_scaling
    sin = jnp.sin(emb) * attention_scaling
    return cos.astype(x.dtype), sin.astype(x.dtype)


if __name__ == "__main__":
    key = jax.random.PRNGKey(0)
    k1, k2, k3, k4 = jax.random.split(key, 4)

    # --- Case 1: small shapes (single block, full-dim escape hatch) ---------
    B, S, hidden, num_heads = 2, 8, 128, 4
    head_dim = hidden // num_heads          # D = 32, half = 16
    rope_theta = 10000.0

    inv_freq, attention_scaling = make_default_inv_freq(head_dim, rope_theta)
    x = jax.random.normal(k1, (B, S, hidden), dtype=jnp.float32)
    position_ids = jax.random.randint(k2, (3, B, S), 0, 1024, dtype=jnp.int32)

    cos, sin = qwen2_5_vl_rotary_embedding(x, position_ids, inv_freq,
                                           attention_scaling)
    cos = jax.block_until_ready(cos)
    sin = jax.block_until_ready(sin)

    cos_ref, sin_ref = _reference(x, position_ids, inv_freq, attention_scaling)
    assert cos.shape == (3, B, S, head_dim) and sin.shape == (3, B, S, head_dim)
    assert jnp.allclose(cos, cos_ref, atol=1e-5, rtol=1e-5)
    assert jnp.allclose(sin, sin_ref, atol=1e-5, rtol=1e-5)

    # --- Case 2: exercise the 2-D tiled grid (real head_dim=128, bf16 out) --
    B2, S2, head_dim2 = 1, 64, 128
    inv_freq2, scaling2 = make_default_inv_freq(head_dim2, rope_theta)
    x2 = jax.random.normal(k3, (B2, S2, head_dim2), dtype=jnp.bfloat16)
    position_ids2 = jax.random.randint(k4, (3, B2, S2), 0, 4096, dtype=jnp.int32)

    cos2, sin2 = qwen2_5_vl_rotary_embedding(
        x2, position_ids2, inv_freq2, scaling2,
        rows_per_block=2, seq_block=16)        # grid = (2, 4), both parallel
    cos2 = jax.block_until_ready(cos2)
    sin2 = jax.block_until_ready(sin2)

    cos2_ref, sin2_ref = _reference(x2, position_ids2, inv_freq2, scaling2)
    assert cos2.shape == (3, B2, S2, head_dim2)
    assert jnp.allclose(cos2.astype(jnp.float32), cos2_ref.astype(jnp.float32),
                        atol=2e-2, rtol=2e-2)
    assert jnp.allclose(sin2.astype(jnp.float32), sin2_ref.astype(jnp.float32),
                        atol=2e-2, rtol=2e-2)

    print("KERNEL_OK")
</pallas_src>

<mosaic_0001>
module attributes {stable_mosaic.version = 11 : i64} {
  func.func @_rope_kernel(%arg0: i32, %arg1: i32, %arg2: memref<1x32xf32, #tpu.memory_space<vmem>>, %arg3: memref<6x8x1xf32, #tpu.memory_space<vmem>>, %arg4: memref<6x8x32xf32, #tpu.memory_space<vmem>>, %arg5: memref<6x8x32xf32, #tpu.memory_space<vmem>>) attributes {dimension_semantics = [#tpu.dimension_semantics<parallel>, #tpu.dimension_semantics<parallel>], iteration_bounds = array<i64: 1, 1>, scalar_prefetch = 0 : i64, scratch_operands = 0 : i64, tpu.core_type = #tpu.core_type<tc>, window_params = [{pipeline_mode = #tpu.pipeline_mode<synchronous>, transform_indices = @transform_0, window_bounds = array<i64: 1, 32>}, {transform_indices = @transform_1, window_bounds = array<i64: 6, 8, 1>}, {transform_indices = @transform_2, window_bounds = array<i64: 6, 8, 32>}, {transform_indices = @transform_3, window_bounds = array<i64: 6, 8, 32>}]} {
    %c0 = arith.constant 0 : index
    %c0_0 = arith.constant 0 : index
    %0 = vector.load %arg2[%c0, %c0_0] : memref<1x32xf32, #tpu.memory_space<vmem>>, vector<1x32xf32>
    %c0_1 = arith.constant 0 : index
    %c0_2 = arith.constant 0 : index
    %c0_3 = arith.constant 0 : index
    %1 = vector.load %arg3[%c0_1, %c0_2, %c0_3] : memref<6x8x1xf32, #tpu.memory_space<vmem>>, vector<6x8x1xf32>
    %2 = vector.shape_cast %0 : vector<1x32xf32> to vector<1x1x32xf32>
    %3 = vector.broadcast %1 : vector<6x8x1xf32> to vector<6x8x32xf32>
    %4 = vector.broadcast %2 : vector<1x1x32xf32> to vector<6x8x32xf32>
    %5 = arith.mulf %3, %4 : vector<6x8x32xf32>
    %6 = math.cos %5 : vector<6x8x32xf32>
    %7 = math.sin %5 : vector<6x8x32xf32>
    %c0_4 = arith.constant 0 : index
    %c0_5 = arith.constant 0 : index
    %c0_6 = arith.constant 0 : index
    %8 = vector.load %arg4[%c0_4, %c0_5, %c0_6] : memref<6x8x32xf32, #tpu.memory_space<vmem>>, vector<6x8x32xf32>
    tpu.vector_store %arg4[%c0_4, %c0_5, %c0_6], %6 {strides = array<i32>} : memref<6x8x32xf32, #tpu.memory_space<vmem>>, vector<6x8x32xf32>,
    %c0_7 = arith.constant 0 : index
    %c0_8 = arith.constant 0 : index
    %c0_9 = arith.constant 0 : index
    %9 = vector.load %arg5[%c0_7, %c0_8, %c0_9] : memref<6x8x32xf32, #tpu.memory_space<vmem>>, vector<6x8x32xf32>
    tpu.vector_store %arg5[%c0_7, %c0_8, %c0_9], %7 {strides = array<i32>} : memref<6x8x32xf32, #tpu.memory_space<vmem>>, vector<6x8x32xf32>,
    return
  }
  func.func @transform_0(%arg0: i32, %arg1: i32) -> (i32, i32) {
    %c0_i32 = arith.constant 0 : i32
    %c0_i32_0 = arith.constant 0 : i32
    %c0_i32_1 = arith.constant 0 : i32
    return %c0_i32, %c0_i32_0 : i32, i32
  }
  func.func @transform_1(%arg0: i32, %arg1: i32) -> (i32, i32, i32) {
    %c0_i32 = arith.constant 0 : i32
    %c0_i32_0 = arith.constant 0 : i32
    return %arg0, %arg1, %c0_i32 : i32, i32, i32
  }
  func.func @transform_2(%arg0: i32, %arg1: i32) -> (i32, i32, i32) {
    %c0_i32 = arith.constant 0 : i32
    %c0_i32_0 = arith.constant 0 : i32
    return %arg0, %arg1, %c0_i32 : i32, i32, i32
  }
  func.func @transform_3(%arg0: i32, %arg1: i32) -> (i32, i32, i32) {
    %c0_i32 = arith.constant 0 : i32
    %c0_i32_0 = arith.constant 0 : i32
    return %arg0, %arg1, %c0_i32 : i32, i32, i32
  }
}

</mosaic_0001>

<bundles_post_ra>
// kernel: tpu_custom_call.1
= control target key start
LH: loop header
LB: loop body
LE: loop exit
PB: predicated region body
PF: predicated region fallthrough
CT: control target
= control target key end

     0   :  { %9 = vsyncpa [#allocation3], 0  ;;  %v1509_v2 = vmov 0   ;;  %s2175_s0 = inlined_call_operand.vmem [shape: f32[1,32], index: 0, kind: input, shape index: {}]   ;;  %s2176_s1 = inlined_call_operand.vmem [shape: f32[6,8,1], index: 1, kind: input, shape index: {}]   ;;  %s2177_s2 = inlined_call_operand.hbm [shape: f32[6,8,32], index: 2, kind: output, shape index: {0}]   ;;  %s2178_s3 = inlined_call_operand.hbm [shape: f32[6,8,32], index: 3, kind: output, shape index: {1}]  }
   0x1   :  { %v18_v0 = vld [vmem:[%s2176_s1 + $0x10] sm:$0xff]  ;;  %v16_v1 = vld [vmem:[%s2176_s1] sm:$0xff]  ;;  %1436 = vset.pattern.permute.xlu1 %v1509_v2  ;;  %1435 = vset.pattern.permute.xlu0 %v1509_v2  ;;  %v19_v3 = vld [vmem:[%s2176_s1 + $0x18] sm:$0xff] }
   0x2   :  { %34 = vperm.xlu1 %1436, %v18_v0   ;;  %24 = vperm.xlu0 %1435, %v16_v1   ;;  %v17_v4 = vld [vmem:[%s2176_s1 + $0x8] sm:$0xff] }
   0x3   :  { %10 = vsyncpa [#allocation5], 0  ;;  %v21_v5 = vld [vmem:[%s2176_s1 + $0x28] sm:$0xff]  ;;  %v20_v6 = vld [vmem:[%s2176_s1 + $0x20] sm:$0xff]  ;;  %v1510_v40 = vmov 683565275  }
   0x4   :  { %v1561_v7 = vld [vmem:[%s2175_s0] ss:$0 sm:$0xff]  ;;  %v1511_v44 = vmov 2475754826   ;;  %v1512_v46 = vmov 2131351028  }
   0x5   :  { %v1513_v48 = vmov 2102212464   ;;  %v1514_v50 = vmov 920167782   ;;  %v1515_v57 = vmov 1326507024  }
   0x6   :  { %39 = vperm.xlu1 %1436, %v19_v3   ;;  %29 = vperm.xlu0 %1435, %v17_v4   ;;  %s1516_s0 = smov [#allocation2]   ;;  %s1517_s26 = smov [#allocation4]  }
   0x7   :  { %s1324_s1 = sshll.u32 %s1516_s0, 4  ;;  %s1336_s27 = sshll.u32 %s1517_s26, 4  ;;  %s1325_s1 = int_to_ptr.vmem [resolvable:$true] %s1324_s1  ;;  %s2142_s27 = int_to_ptr.vmem [resolvable:$true] %s1336_s27 }
   0x8   :  { %s1461_s28 = scalar_lea.vmem %s1325_s1, 768  ;;  %p1466_p1 = scmp.lt.s32.totalorder %s1325_s1, %s1325_s1 }
   0x9   :  { %p1462_p0 = scmp.ne.s32.totalorder %s1325_s1, %s1461_s28  ;;  %p1467_p2 = scmp.lt.s32.totalorder %s1461_s28, %s1461_s28 }
   0xa   :  { %49 = vperm.xlu1 %1436, %v21_v5   ;;  %44 = vperm.xlu0 %1435, %v20_v6  }
   0xb   :  { %p1468_p3 = por %p1467_p2, %p1466_p1 }
   0xd   :  { %p1469_p4 = pnand %p1468_p3, %p1462_p0 }
  0x81   :  { %v35_v8 = vpop.permute.xlu1 %34  ;;  %v25_v9 = vpop.permute.xlu0 %24 }
  0x82   :  { %v1564_v10 = vmul.f32 %v1561_v7, %v35_v8  ;;  %v1567_v11 = vmul.f32 %v1561_v7, %v25_v9 }
  0x84   :  { %v270_v12 = vand.u32 2147483647, %v1564_v10  ;;  %v273_v13 = vand.u32 2139095040, %v1564_v10  ;;  %v64_v14 = vand.u32 2147483647, %v1567_v11  ;;  %v67_v15 = vand.u32 2139095040, %v1567_v11 }
  0x85   :  { %v40_v16 = vpop.permute.xlu1 %39  ;;  %vm272_vm14 = vcmp.lt.s32.totalorder %v1564_v10, 0 }
  0x86   :  { %v274_v17 = vshrl.u32 %v273_v13, 23  ;;  %v1574_v18 = vmul.f32 %v1561_v7, %v40_v16  ;;  %v277_v19 = vand.u32 8388607, %v270_v12  ;;  %v68_v20 = vshrl.u32 %v67_v15, 23 }
  0x87   :  { %v71_v21 = vand.u32 8388607, %v64_v14  ;;  %vm1664_vm13 = vcmp.le.f32.partialorder %v270_v12, 0.7853982 }
  0x88   :  { %v1360_v22 = vadd.s32 4294967169, %v274_v17  ;;  %v1352_v23 = vadd.s32 4294967169, %v68_v20  ;;  %v376_v24 = vand.u32 2139095040, %v1574_v18  ;;  %v278_v26 = vor.u32 8388608, %v277_v19 }
  0x89   :  { %v72_v27 = vor.u32 8388608, %v71_v21  ;;  %v373_v38 = vand.u32 2147483647, %v1574_v18 }
  0x8a   :  { %v280_v25 = vadd.s32 1, %v1360_v22  ;;  %v74_v28 = vadd.s32 1, %v1352_v23  ;;  %v377_v29 = vshrl.u32 %v376_v24, 23  ;;  %v1581_v35 = vshll.u32 %v278_v26, 8 }
  0x8b   :  { %v1585_v37 = vshll.u32 %v72_v27, 8 }
  0x8c   :  { %vm281_vm0 = vcmp.gt.s32.totalorder %v280_v25, 0  ;;  %vm75_vm1 = vcmp.gt.s32.totalorder %v74_v28, 0  ;;  %v1364_v31 = vadd.s32 4294967169, %v377_v29 }
  0x8d   :  { %v282_v30 = vsel %vm281_vm0, %v280_v25, 0  ;;  %v76_v34 = vsel %vm75_vm1, %v74_v28, 0  ;;  %vm66_vm0 = vcmp.lt.s32.totalorder %v1567_v11, 0 }
  0x8e   :  { %v283_v32 = vshrl.u32 %v282_v30, 5  ;;  %v284_v33 = vand.u32 31, %v282_v30  ;;  %v1583_v36 = vshrl.u32 %v76_v34, 5  ;;  %v78_v42 = vand.u32 31, %v76_v34 }
  0x8f   :  { %v1589_v43 = vadd.s32 1, %v1364_v31 }
  0x90   :  { %v285_v39 = vsub.s32 32, %v284_v33  ;;  %v287_v41 = vshll.u32 %v1510_v40, %v284_v33  ;;  %v290_v45 = vshll.u32 %v1511_v44, %v284_v33  ;;  %v293_v47 = vshll.u32 %v1512_v46, %v284_v33 }
  0x91   :  { %v296_v49 = vshll.u32 %v1513_v48, %v284_v33  ;;  %v299_v51 = vshll.u32 %v1514_v50, %v284_v33  ;;  %vm302_vm2 = vcmp.lt.s32.totalorder %v283_v32, 1  ;;  %vm303_vm3 = vcmp.lt.s32.totalorder %v283_v32, 2 }
  0x92   :  { %v288_v52 = vshrl.u32 %v1511_v44, %v285_v39  ;;  %v291_v53 = vshrl.u32 %v1512_v46, %v285_v39  ;;  %v294_v54 = vshrl.u32 %v1513_v48, %v285_v39  ;;  %v286_v55 = vshrl.u32 %v1510_v40, %v285_v39 }
  0x93   :  { %v297_v56 = vshrl.u32 %v1514_v50, %v285_v39  ;;  %v300_v58 = vshrl.u32 %v1515_v57, %v285_v39  ;;  %v79_v62 = vsub.s32 32, %v78_v42  ;;  %vm304_vm4 = vcmp.lt.s32.totalorder %v283_v32, 3 }
  0x94   :  { %v289_v59 = vor.u32 %v288_v52, %v287_v41  ;;  %v292_v60 = vor.u32 %v291_v53, %v290_v45  ;;  %v295_v61 = vor.u32 %v294_v54, %v293_v47  ;;  %vm305_vm5 = vcmp.lt.s32.totalorder %v283_v32, 4 }
  0x95   :  { %v298_v63 = vor.u32 %v297_v56, %v296_v49  ;;  %v301_v0 = vor.u32 %v300_v58, %v299_v51  ;;  %v81_v9 = vshll.u32 %v1510_v40, %v78_v42  ;;  %v82_v16 = vshrl.u32 %v1511_v44, %v79_v62 }
  0x96   :  { %v306_v1 = vsel %vm302_vm2, %v286_v55, %v289_v59  ;;  %v307_v2 = vsel %vm305_vm5, %v295_v61, 2102212464  ;;  %v310_v3 = vsel %vm302_vm2, %v289_v59, %v292_v60  ;;  %v314_v4 = vsel %vm302_vm2, %v292_v60, %v295_v61 }
  0x97   :  { %v308_v5 = vsel %vm304_vm4, %v292_v60, %v307_v2  ;;  %v311_v6 = vsel %vm305_vm5, %v298_v63, 920167782  ;;  %v315_v8 = vsel %vm305_vm5, %v301_v0, 1326507024  ;;  %v84_v17 = vshll.u32 %v1511_v44, %v78_v42  ;;  %v30_v60 = vpop.permute.xlu0 %29 }
  0x98   :  { %v312_v13 = vsel %vm304_vm4, %v295_v61, %v311_v6  ;;  %v316_v15 = vsel %vm304_vm4, %v298_v63, %v315_v8  ;;  %v309_v19 = vsel %vm303_vm3, %v306_v1, %v308_v5  ;;  %v85_v22 = vshrl.u32 %v1512_v46, %v79_v62 }
  0x99   :  { %v313_v20 = vsel %vm303_vm3, %v310_v3, %v312_v13  ;;  %v317_v21 = vsel %vm303_vm3, %v314_v4, %v316_v15  ;;  %v83_v27 = vor.u32 %v82_v16, %v81_v9  ;;  %v87_v29 = vshll.u32 %v1512_v46, %v78_v42 }
  0x9a   :  { %v1612_v23 = vmul.u32.u64.low %v1581_v35, %v317_v21  ;;  %v1613_v24 = vmul.u32.u64.high %v1581_v35, %v317_v21, %v1612_v23  ;;  %v1616_v25 = vmul.u32.u64.low %v1581_v35, %v313_v20  ;;  %v1617_v26 = vmul.u32.u64.high %v1581_v35, %v313_v20, %v1616_v25 }
  0x9b   :  { %v86_v28 = vor.u32 %v85_v22, %v84_v17  ;;  %v88_v30 = vshrl.u32 %v1513_v48, %v79_v62  ;;  %v80_v31 = vshrl.u32 %v1510_v40, %v79_v62  ;;  %v90_v32 = vshll.u32 %v1513_v48, %v78_v42 }
  0x9c   :  { %v91_v33 = vshrl.u32 %v1514_v50, %v79_v62  ;;  %v94_v34 = vshrl.u32 %v1515_v57, %v79_v62  ;;  %v325_v39 = vmul.u32 %v1581_v35, %v309_v19  ;;  %v93_v45 = vshll.u32 %v1514_v50, %v78_v42 }
  0x9d   :  { %v89_v41 = vor.u32 %v88_v30, %v87_v29  ;;  %vm96_vm6 = vcmp.lt.s32.totalorder %v1583_v36, 1  ;;  %vm327_vm7 = vc.u32 %v1613_v24, %v1616_v25  ;;  %v328_v47 = vadd.s32 1, %v1617_v26 }
  0x9e   :  { %v92_v49 = vor.u32 %v91_v33, %v90_v32  ;;  %vm97_vm8 = vcmp.lt.s32.totalorder %v1583_v36, 2  ;;  %v95_v51 = vor.u32 %v94_v34, %v93_v45  ;;  %vm98_vm9 = vcmp.lt.s32.totalorder %v1583_v36, 3 }
  0x9f   :  { %vm99_vm10 = vcmp.lt.s32.totalorder %v1583_v36, 4  ;;  %v104_v52 = vsel %vm96_vm6, %v83_v27, %v86_v28  ;;  %v329_v35 = vsel %vm327_vm7, %v328_v47, %v1617_v26  ;;  %v108_v54 = vsel %vm96_vm6, %v86_v28, %v89_v41 }
  0xa0   :  { %v101_v53 = vsel %vm99_vm10, %v89_v41, 2102212464  ;;  %v105_v42 = vsel %vm99_vm10, %v92_v49, 920167782  ;;  %v330_v55 = vadd.s32 %v329_v35, %v325_v39  ;;  %v100_v56 = vsel %vm96_vm6, %v80_v31, %v83_v27 }
  0xa1   :  { %v106_v58 = vsel %vm98_vm9, %v89_v41, %v105_v42  ;;  %v109_v59 = vsel %vm99_vm10, %v95_v51, 1326507024  ;;  %v102_v61 = vsel %vm98_vm9, %v86_v28, %v101_v53  ;;  %vm384_vm11 = vcmp.gt.s32.totalorder %v1589_v43, 0 }
  0xa2   :  { %v107_v62 = vsel %vm97_vm8, %v104_v52, %v106_v58  ;;  %v110_v63 = vsel %vm98_vm9, %v92_v49, %v109_v59  ;;  %v331_v0 = vadd.s32 536870912, %v330_v55  ;;  %v1650_v6 = vmul.f32 %v1561_v7, %v30_v60 }
  0xa3   :  { %v111_v1 = vsel %vm97_vm8, %v108_v54, %v110_v63  ;;  %v1642_v2 = vmul.u32.u64.low %v1585_v37, %v107_v62  ;;  %v1643_v3 = vmul.u32.u64.high %v1585_v37, %v107_v62, %v1642_v2  ;;  %v103_v9 = vsel %vm97_vm8, %v100_v56, %v102_v61 }
  0xa4   :  { %v1646_v4 = vmul.u32.u64.low %v1585_v37, %v111_v1  ;;  %v1647_v5 = vmul.u32.u64.high %v1585_v37, %v111_v1, %v1646_v4  ;;  %v332_v8 = vshrl.u32 %v331_v0, 30  ;;  %v385_v13 = vsel %vm384_vm11, %v1589_v43, 0 }
  0xa5   :  { %v122_v16 = vadd.s32 1, %v1643_v3  ;;  %v380_v17 = vand.u32 8388607, %v373_v38  ;;  %v119_v19 = vmul.u32 %v1585_v37, %v103_v9  ;;  %v170_v20 = vand.u32 2139095040, %v1650_v6 }
  0xa6   :  { %v333_v15 = vshll.u32 %v332_v8, 30  ;;  %vm121_vm12 = vc.u32 %v1647_v5, %v1642_v2  ;;  %v387_v23 = vand.u32 31, %v385_v13  ;;  %v356_v30 = vsub.s32 4, %v332_v8 }
  0xa7   :  { %v123_v22 = vsel %vm121_vm12, %v122_v16, %v1643_v3  ;;  %v381_v27 = vor.u32 8388608, %v380_v17  ;;  %v171_v28 = vshrl.u32 %v170_v20, 23  ;;  %v167_v33 = vand.u32 2147483647, %v1650_v6 }
  0xa8   :  { %v334_v21 = vsub.s32 %v330_v55, %v333_v15  ;;  %v124_v36 = vadd.s32 %v123_v22, %v119_v19  ;;  %v388_v31 = vsub.s32 32, %v387_v23  ;;  %v326_v34 = vadd.s32 %v1616_v25, %v1613_v24 }
  0xa9   :  { %v1674_v41 = vshrl.u32 %v385_v13, 5  ;;  %v1676_v45 = vshll.u32 %v381_v27, 8  ;;  %v1679_v47 = vadd.s32 %v1642_v2, %v1647_v5  ;;  %v390_v49 = vshll.u32 %v1510_v40, %v387_v23 }
  0xaa   :  { %v336_v26 = vsub.s32 0, %v334_v21  ;;  %v125_v43 = vadd.s32 536870912, %v124_v36  ;;  %v1356_v51 = vadd.s32 4294967169, %v171_v28  ;;  %v357_v35 = vsel %vm272_vm14, %v356_v30, %v332_v8 }
  0xab   :  { %v393_v53 = vshll.u32 %v1511_v44, %v387_v23  ;;  %v400_v24 = vshrl.u32 %v1514_v50, %v388_v31  ;;  %v391_v42 = vshrl.u32 %v1511_v44, %v388_v31  ;;  %v394_v54 = vshrl.u32 %v1512_v46, %v388_v31 }
  0xac   :  { %v1361_v29 = vmin.u32 %v336_v26, %v334_v21  ;;  %v1669_v32 = vshrl.u32 %v125_v43, 30  ;;  %v397_v55 = vshrl.u32 %v1513_v48, %v388_v31  ;;  %v389_v56 = vshrl.u32 %v1510_v40, %v388_v31 }
  0xad   :  { %v399_v58 = vshll.u32 %v1513_v48, %v387_v23  ;;  %v403_v59 = vshrl.u32 %v1515_v57, %v388_v31  ;;  %v1697_v61 = vsel %vm1664_vm13, 0, %v357_v35  ;;  %v396_v63 = vshll.u32 %v1512_v46, %v387_v23 }
  0xae   :  { %v338_v39 = vclz %v1361_v29  ;;  %v127_v12 = vshll.u32 %v1669_v32, 30  ;;  %v402_v3 = vshll.u32 %v1514_v50, %v387_v23  ;;  %v392_v5 = vor.u32 %v391_v42, %v390_v49 }
  0xaf   :  { %v401_v2 = vor.u32 %v400_v24, %v399_v58  ;;  %v395_v8 = vor.u32 %v394_v54, %v393_v53  ;;  %v398_v9 = vor.u32 %v397_v55, %v396_v63  ;;  %v150_v20 = vsub.s32 4, %v1669_v32 }
  0xb0   :  { %v1362_v52 = vadd.s32 4294967294, %v338_v39  ;;  %v1687_v25 = vsub.s32 %v124_v36, %v127_v12  ;;  %v404_v17 = vor.u32 %v403_v59, %v402_v3  ;;  %vm405_vm1 = vcmp.lt.s32.totalorder %v1674_v41, 1 }
  0xb1   :  { %vm408_vm2 = vcmp.lt.s32.totalorder %v1674_v41, 4  ;;  %vm406_vm3 = vcmp.lt.s32.totalorder %v1674_v41, 2  ;;  %vm407_vm4 = vcmp.lt.s32.totalorder %v1674_v41, 3  ;;  %v417_v27 = vsel %vm405_vm1, %v395_v8, %v398_v9 }
  0xb2   :  { %vm1363_vm15 = vcmp.lt.s32.totalorder %v1362_v52, 0  ;;  %v130_v62 = vsub.s32 0, %v1687_v25  ;;  %v414_v36 = vsel %vm408_vm2, %v401_v2, 920167782  ;;  %vm1715_vm5 = vcmp.le.f32.partialorder %v64_v14, 0.7853982 }
  0xb3   :  { %v341_v60 = vsel %vm1363_vm15, 0, %v1362_v52  ;;  %v410_v29 = vsel %vm408_vm2, %v398_v9, 2102212464  ;;  %v415_v30 = vsel %vm407_vm4, %v398_v9, %v414_v36  ;;  %v418_v31 = vsel %vm408_vm2, %v404_v17, 1326507024 }
  0xb4   :  { %v342_v0 = vsub.s32 32, %v341_v60  ;;  %v346_v1 = vsub.s32 4294967266, %v341_v60  ;;  %v1353_v4 = vmin.u32 %v130_v62, %v1687_v25  ;;  %v343_v13 = vshll.u32 %v334_v21, %v341_v60 }
  0xb5   :  { %v413_v21 = vsel %vm405_vm1, %v392_v5, %v395_v8  ;;  %v409_v39 = vsel %vm405_vm1, %v389_v56, %v392_v5  ;;  %v419_v12 = vsel %vm407_vm4, %v401_v2, %v418_v31  ;;  %v411_v42 = vsel %vm407_vm4, %v395_v8, %v410_v29 }
  0xb6   :  { %v344_v15 = vshrl.u32 %v326_v34, %v342_v0  ;;  %v347_v16 = vadd.s32 127, %v346_v1  ;;  %v132_v19 = vclz %v1353_v4  ;;  %v416_v14 = vsel %vm406_vm3, %v413_v21, %v415_v30 }
  0xb7   :  { %v420_v35 = vsel %vm406_vm3, %v417_v27, %v419_v12  ;;  %v177_v54 = vadd.s32 1, %v1356_v51  ;;  %v1738_v63 = vmul.u32.u64.low %v1676_v45, %v416_v14  ;;  %v1739_v0 = vmul.u32.u64.high %v1676_v45, %v416_v14, %v1738_v63 }
  0xb8   :  { %v345_v22 = vor.u32 %v344_v15, %v343_v13  ;;  %v348_v23 = vshll.u32 %v347_v16, 23  ;;  %v1354_v26 = vadd.s32 4294967294, %v132_v19  ;;  %v983_v2 = vadd.s32 3, %v1697_v61  ;;  %v50_v16 = vpop.permute.xlu1 %49 }
  0xb9   :  { %v1733_v58 = vmul.u32.u64.low %v1676_v45, %v420_v35  ;;  %v1734_v59 = vmul.u32.u64.high %v1676_v45, %v420_v35, %v1733_v58  ;;  %v151_v51 = vsel %vm66_vm0, %v150_v20, %v1669_v32  ;;  %vm178_vm7 = vcmp.gt.s32.totalorder %v177_v54, 0 }
  0xba   :  { %v349_v43 = vor.u32 4788187, %v348_v23  ;;  %v352_v34 = vcvt.s32.f32 %v345_v22  ;;  %vm1355_vm6 = vcmp.lt.s32.totalorder %v1354_v26, 0  ;;  %v412_v4 = vsel %vm406_vm3, %v409_v39, %v411_v42 }
  0xbb   :  { %v135_v52 = vsel %vm1355_vm6, 0, %v1354_v26  ;;  %v1751_v8 = vand.u32 3, %v1697_v61  ;;  %vm430_vm8 = vc.u32 %v1734_v59, %v1738_v63  ;;  %v1757_v9 = vand.u32 8388607, %v167_v33 }
  0xbc   :  { %v350_v49 = vand.u32 2147483647, %v349_v43  ;;  %v136_v53 = vsub.s32 32, %v135_v52  ;;  %v140_v24 = vsub.s32 4294967266, %v135_v52  ;;  %v137_v56 = vshll.u32 %v1687_v25, %v135_v52 }
  0xbd   :  { %v153_v13 = vsel %vm1715_vm5, 0, %v151_v51  ;;  %v431_v15 = vadd.s32 1, %v1739_v0  ;;  %v1765_v61 = vand.u32 3, %v983_v2  ;;  %v428_v17 = vmul.u32 %v1676_v45, %v412_v4 }
  0xbe   :  { %v353_v55 = vmul.f32 %v352_v34, %v350_v49  ;;  %v138_v60 = vshrl.u32 %v1679_v47, %v136_v53  ;;  %v141_v62 = vadd.s32 127, %v140_v24  ;;  %v179_v47 = vsel %vm178_vm7, %v177_v54, 0 }
  0xbf   :  { %v181_v19 = vand.u32 31, %v179_v47  ;;  %v432_v23 = vsel %vm430_vm8, %v431_v15, %v1739_v0  ;;  %v775_v37 = vadd.s32 3, %v153_v13  ;;  %v1772_v21 = vmul.f32 %v1561_v7, %v50_v16 }
  0xc0   :  { %v354_v1 = vxor.u32 2147483648, %v353_v55  ;;  %v139_v25 = vor.u32 %v138_v60, %v137_v56  ;;  %v142_v3 = vshll.u32 %v141_v62, 23  ;;  %v433_v36 = vadd.s32 %v432_v23, %v428_v17 }
  0xc1   :  { %v1769_v26 = vsub.s32 32, %v181_v19  ;;  %v1774_v43 = vshrl.u32 %v179_v47, 5  ;;  %v184_v29 = vshll.u32 %v1510_v40, %v181_v19  ;;  %v187_v45 = vshll.u32 %v1511_v44, %v181_v19 }
  0xc2   :  { %v355_v5 = vsel %vm272_vm14, %v354_v1, %v353_v55  ;;  %v143_v41 = vor.u32 4788187, %v142_v3  ;;  %v146_v22 = vcvt.s32.f32 %v139_v25  ;;  %vm368_vm9 = vcmp.eq.s32.totalorder %v1751_v8, 2 }
  0xc3   :  { %v358_v32 = vsel %vm1664_vm13, %v1564_v10, %v355_v5  ;;  %v434_v30 = vadd.s32 536870912, %v433_v36  ;;  %v185_v31 = vshrl.u32 %v1511_v44, %v1769_v26  ;;  %v188_v34 = vshrl.u32 %v1512_v46, %v1769_v26 }
  0xc4   :  { %1437 = vcosq.f32 %v358_v32  ;;  %v144_v20 = vand.u32 2147483647, %v143_v41  ;;  %v190_v39 = vshll.u32 %v1512_v46, %v181_v19  ;;  %vm365_vm10 = vcmp.eq.s32.totalorder %v1751_v8, 0 }
  0xc5   :  { %1439 = vsinq.f32 %v358_v32  ;;  %vm986_vm11 = vcmp.eq.s32.totalorder %v1765_v61, 0  ;;  %v191_v49 = vshrl.u32 %v1513_v48, %v1769_v26  ;;  %v193_v52 = vshll.u32 %v1513_v48, %v181_v19 }
  0xc6   :  { %v147_v27 = vmul.f32 %v146_v22, %v144_v20  ;;  %v194_v14 = vshrl.u32 %v1514_v50, %v1769_v26  ;;  %vm1306_vm12 = vcmask 261120   ;;  %vm364_vm13 = vcmp.lt.s32.totalorder %v1751_v8, 2 }
  0xc7   :  { %vm985_vm14 = vcmp.lt.s32.totalorder %v1765_v61, 2  ;;  %vm989_vm15 = vcmp.eq.s32.totalorder %v1765_v61, 2  ;;  %v1794_v35 = vand.u32 3, %v153_v13  ;;  %v1796_v53 = vshrl.u32 %v434_v30, 30 }
  0xc8   :  { %v148_v12 = vxor.u32 2147483648, %v147_v27  ;;  %v1798_v24 = vor.u32 %v185_v31, %v184_v29  ;;  %vm362_vm1 = vweird.f32 %v1564_v10  ;;  %v189_v54 = vor.u32 %v188_v34, %v187_v45 }
  0xc9   :  { %v192_v55 = vor.u32 %v191_v49, %v190_v39  ;;  %v195_v56 = vor.u32 %v194_v14, %v193_v52  ;;  %v436_v60 = vshll.u32 %v1796_v53, 30  ;;  %v175_v62 = vor.u32 8388608, %v1757_v9 }
  0xca   :  { %v149_v42 = vsel %vm66_vm0, %v148_v12, %v147_v27  ;;  %vm202_vm2 = vcmp.lt.s32.totalorder %v1774_v43, 4  ;;  %v1809_v0 = vand.u32 3, %v775_v37  ;;  %v197_v1 = vshrl.u32 %v1515_v57, %v1769_v26 }
  0xcb   :  { %v152_v58 = vsel %vm1715_vm5, %v1567_v11, %v149_v42  ;;  %v208_v2 = vsel %vm202_vm2, %v195_v56, 920167782  ;;  %vm375_vm0 = vcmp.lt.s32.totalorder %v1574_v18, 0  ;;  %v1816_v28 = vsub.s32 %v433_v36, %v436_v60 }
  0xcc   :  { %1441 = vcosq.f32 %v152_v58  ;;  %vm199_vm3 = vcmp.lt.s32.totalorder %v1774_v43, 1  ;;  %vm201_vm4 = vcmp.lt.s32.totalorder %v1774_v43, 3  ;;  %v196_v4 = vshll.u32 %v1514_v50, %v181_v19 }
  0xcd   :  { %1443 = vsinq.f32 %v152_v58  ;;  %v207_v47 = vsel %vm199_vm3, %v1798_v24, %v189_v54  ;;  %v209_v5 = vsel %vm201_vm4, %v192_v55, %v208_v2  ;;  %v439_v32 = vsub.s32 0, %v1816_v28 }
  0xce   :  { %v1438_v51 = vpop.eup %1437  ;;  %v1827_v41 = vshll.u32 %v175_v62, 8  ;;  %v582_v13 = vand.u32 2139095040, %v1772_v21  ;;  %vm162_vm5 = vcmp.eq.s32.totalorder %v1794_v35, 2  ;;  %v198_v17 = vor.u32 %v197_v1, %v196_v4 }
  0xcf   :  { %v1440_v25 = vpop.eup %1439  ;;  %v369_v3 = vxor.u32 2147483648, %v1438_v51  ;;  %vm200_vm6 = vcmp.lt.s32.totalorder %v1774_v43, 2  ;;  %vm159_vm7 = vcmp.eq.s32.totalorder %v1794_v35, 0  ;;  %v1365_v22 = vmin.u32 %v439_v32, %v1816_v28 }
  0xd0   :  { %v366_v9 = vxor.u32 2147483648, %v1440_v25  ;;  %v210_v23 = vsel %vm200_vm6, %v207_v47, %v209_v5  ;;  %vm158_vm8 = vcmp.lt.s32.totalorder %v1794_v35, 2  ;;  %v459_v27 = vsub.s32 4, %v1796_v53 }
  0xd1   :  { %v370_v15 = vsel %vm368_vm9, %v369_v3, %v1440_v25  ;;  %v991_v16 = vsel %vm989_vm15, %v369_v3, %v1440_v25  ;;  %vm777_vm9 = vcmp.lt.s32.totalorder %v1809_v0, 2  ;;  %v183_v29 = vshrl.u32 %v1510_v40, %v1769_v26 }
  0xd2   :  { %v367_v19 = vsel %vm365_vm10, %v1438_v51, %v366_v9  ;;  %v988_v20 = vsel %vm986_vm11, %v1438_v51, %v366_v9  ;;  %vm156_vm10 = vweird.f32 %v1567_v11  ;;  %v441_v8 = vclz %v1365_v22 }
  0xd3   :  { %v371_v37 = vsel %vm364_vm13, %v367_v19, %v370_v15  ;;  %v992_v36 = vsel %vm985_vm14, %v988_v20, %v991_v16  ;;  %v204_v61 = vsel %vm202_vm2, %v192_v55, 2102212464  ;;  %v211_v31 = vsel %vm199_vm3, %v189_v54, %v192_v55 }
  0xd4   :  { %v372_v45 = vsel %vm362_vm1, nan, %v371_v37  ;;  %v993_v30 = vsel %vm362_vm1, nan, %v992_v36  ;;  %v212_v26 = vsel %vm202_vm2, %v198_v17, 1326507024  ;;  %vm778_vm11 = vcmp.eq.s32.totalorder %v1809_v0, 0  ;;  %v45_v37 = vpop.permute.xlu0 %44 }
  0xd5   :  { %1309 = vst.msk [vmem:[#allocation2 + $0x10] sm:$0xff] %vm1306_vm12, %v372_v45  ;;  %1315 = vst.msk [vmem:[#allocation4 + $0x10] sm:$0xff] %vm1306_vm12, %v993_v30  ;;  %v1867_v34 = vmul.u32.u64.low %v1827_v41, %v210_v23  ;;  %v1868_v10 = vmul.u32.u64.high %v1827_v41, %v210_v23, %v1867_v34  ;;  %vm781_vm13 = vcmp.eq.s32.totalorder %v1809_v0, 2  ;;  %vm1875_vm14 = vcmp.le.f32.partialorder %v373_v38, 0.7853982 }
  0xd6   :  { %v429_v12 = vadd.s32 %v1738_v63, %v1734_v59  ;;  %v1366_v49 = vadd.s32 4294967294, %v441_v8  ;;  %v1442_v52 = vpop.eup %1441  ;;  %v460_v14 = vsel %vm375_vm0, %v459_v27, %v1796_v53  ;;  %v203_v42 = vsel %vm199_vm3, %v183_v29, %v1798_v24 }
  0xd7   :  { %v205_v55 = vsel %vm201_vm4, %v189_v54, %v204_v61  ;;  %v213_v38 = vsel %vm201_vm4, %v195_v56, %v212_v26  ;;  %v1444_v58 = vpop.eup %1443  ;;  %v163_v60 = vxor.u32 2147483648, %v1442_v52  ;;  %v583_v63 = vshrl.u32 %v582_v13, 23 }
  0xd8   :  { %vm1367_vm15 = vcmp.lt.s32.totalorder %v1366_v49, 0  ;;  %v214_v59 = vsel %vm200_vm6, %v211_v31, %v213_v38  ;;  %v160_v62 = vxor.u32 2147483648, %v1444_v58  ;;  %v206_v51 = vsel %vm200_vm6, %v203_v42, %v205_v55 }
  0xd9   :  { %v444_v1 = vsel %vm1367_vm15, 0, %v1366_v49  ;;  %v1894_v53 = vmul.u32.u64.low %v1827_v41, %v214_v59  ;;  %v1895_v2 = vmul.u32.u64.high %v1827_v41, %v214_v59, %v1894_v53  ;;  %v164_v24 = vsel %vm162_vm5, %v163_v60, %v1444_v58 }
  0xda   :  { %v783_v54 = vsel %vm781_vm13, %v163_v60, %v1444_v58  ;;  %v445_v56 = vsub.s32 32, %v444_v1  ;;  %v161_v25 = vsel %vm159_vm7, %v1442_v52, %v160_v62  ;;  %v780_v3 = vsel %vm778_vm11, %v1442_v52, %v160_v62 }
  0xdb   :  { %v449_v4 = vsub.s32 4294967266, %v444_v1  ;;  %v225_v47 = vadd.s32 1, %v1868_v10  ;;  %v165_v5 = vsel %vm158_vm8, %v161_v25, %v164_v24  ;;  %v784_v9 = vsel %vm777_vm9, %v780_v3, %v783_v54 }
  0xdc   :  { %v447_v32 = vshrl.u32 %v429_v12, %v445_v56  ;;  %v1372_v13 = vadd.s32 4294967169, %v583_v63  ;;  %v166_v43 = vsel %vm156_vm10, nan, %v165_v5  ;;  %v785_v15 = vsel %vm156_vm10, nan, %v784_v9 }
  0xdd   :  { %v446_v16 = vshll.u32 %v1816_v28, %v444_v1  ;;  %v450_v17 = vadd.s32 127, %v449_v4  ;;  %1307 = vst.msk [vmem:[#allocation2] sm:$0xff] %vm1306_vm12, %v166_v43  ;;  %1313 = vst.msk [vmem:[#allocation4] sm:$0xff] %vm1306_vm12, %v785_v15  ;;  %v222_v35 = vmul.u32 %v1827_v41, %v206_v51  ;;  %vm224_vm1 = vc.u32 %v1895_v2, %v1867_v34 }
  0xde   :  { %v579_v0 = vand.u32 2147483647, %v1772_v21  ;;  %v589_v19 = vadd.s32 1, %v1372_v13  ;;  %v462_v11 = vsel %vm1875_vm14, 0, %v460_v14  ;;  %v226_v28 = vsel %vm224_vm1, %v225_v47, %v1868_v10 }
  0xdf   :  { %v448_v20 = vor.u32 %v447_v32, %v446_v16  ;;  %v451_v22 = vshll.u32 %v450_v17, 23  ;;  %v227_v23 = vadd.s32 %v226_v28, %v222_v35  ;;  %v1087_v29 = vadd.s32 3, %v462_v11 }
  0xe0   :  { %vm590_vm2 = vcmp.gt.s32.totalorder %v589_v19, 0  ;;  %v586_v45 = vand.u32 8388607, %v579_v0  ;;  %v1929_v31 = vmul.f32 %v1561_v7, %v45_v37  ;;  %v1933_v49 = vand.u32 3, %v462_v11 }
  0xe1   :  { %v452_v36 = vor.u32 4788187, %v451_v22  ;;  %v591_v27 = vsel %vm590_vm2, %v589_v19, 0  ;;  %v228_v41 = vadd.s32 536870912, %v227_v23  ;;  %v455_v61 = vcvt.s32.f32 %v448_v20 }
  0xe2   :  { %v593_v30 = vand.u32 31, %v591_v27  ;;  %v1935_v52 = vand.u32 3, %v1087_v29  ;;  %v587_v42 = vor.u32 8388608, %v586_v45  ;;  %v479_v60 = vand.u32 2139095040, %v1929_v31 }
  0xe3   :  { %v453_v8 = vand.u32 2147483647, %v452_v36  ;;  %v1931_v26 = vshrl.u32 %v228_v41, 30  ;;  %v1943_v59 = vshrl.u32 %v591_v27, 5  ;;  %v223_v39 = vadd.s32 %v1867_v34, %v1895_v2 }
  0xe4   :  { %v594_v12 = vsub.s32 32, %v593_v30  ;;  %v596_v53 = vshll.u32 %v1510_v40, %v593_v30  ;;  %v599_v24 = vshll.u32 %v1511_v44, %v593_v30  ;;  %v602_v25 = vshll.u32 %v1512_v46, %v593_v30 }
  0xe5   :  { %v456_v10 = vmul.f32 %v455_v61, %v453_v8  ;;  %v230_v14 = vshll.u32 %v1931_v26, 30  ;;  %v605_v3 = vshll.u32 %v1513_v48, %v593_v30  ;;  %v608_v5 = vshll.u32 %v1514_v50, %v593_v30 }
  0xe6   :  { %v597_v38 = vshrl.u32 %v1511_v44, %v594_v12  ;;  %v600_v58 = vshrl.u32 %v1512_v46, %v594_v12  ;;  %v603_v63 = vshrl.u32 %v1513_v48, %v594_v12  ;;  %v606_v62 = vshrl.u32 %v1514_v50, %v594_v12 }
  0xe7   :  { %v457_v55 = vxor.u32 2147483648, %v456_v10  ;;  %v1941_v7 = vsub.s32 %v227_v23, %v230_v14  ;;  %v609_v54 = vshrl.u32 %v1515_v57, %v594_v12  ;;  %v480_v15 = vshrl.u32 %v479_v60, 23 }
  0xe8   :  { %v598_v4 = vor.u32 %v597_v38, %v596_v53  ;;  %v601_v47 = vor.u32 %v600_v58, %v599_v24  ;;  %v604_v32 = vor.u32 %v603_v63, %v602_v25  ;;  %v607_v13 = vor.u32 %v606_v62, %v605_v3 }
  0xe9   :  { %v458_v1 = vsel %vm375_vm0, %v457_v55, %v456_v10  ;;  %v233_v51 = vsub.s32 0, %v1941_v7  ;;  %vm169_vm0 = vcmp.lt.s32.totalorder %v1650_v6, 0  ;;  %v610_v43 = vor.u32 %v609_v54, %v608_v5 }
  0xea   :  { %v461_v56 = vsel %vm1875_vm14, %v1574_v18, %v458_v1  ;;  %vm611_vm3 = vcmp.lt.s32.totalorder %v1943_v59, 1  ;;  %v1964_v17 = vshll.u32 %v587_v42, 8  ;;  %v476_v35 = vand.u32 2147483647, %v1929_v31 }
  0xeb   :  { %1445 = vcosq.f32 %v461_v56  ;;  %v1357_v9 = vmin.u32 %v233_v51, %v1941_v7  ;;  %vm471_vm4 = vcmp.eq.s32.totalorder %v1933_v49, 2  ;;  %vm1093_vm5 = vcmp.eq.s32.totalorder %v1935_v52, 2 }
  0xec   :  { %1447 = vsinq.f32 %v461_v56  ;;  %v253_v19 = vsub.s32 4, %v1931_v26  ;;  %vm612_vm6 = vcmp.lt.s32.totalorder %v1943_v59, 2  ;;  %vm614_vm7 = vcmp.lt.s32.totalorder %v1943_v59, 4 }
  0xed   :  { %v235_v16 = vclz %v1357_v9  ;;  %v619_v34 = vsel %vm611_vm3, %v598_v4, %v601_v47  ;;  %vm468_vm8 = vcmp.eq.s32.totalorder %v1933_v49, 0  ;;  %vm1090_vm9 = vcmp.eq.s32.totalorder %v1935_v52, 0 }
  0xee   :  { %vm1978_vm10 = vcmp.le.f32.partialorder %v167_v33, 0.7853982  ;;  %vm613_vm11 = vcmp.lt.s32.totalorder %v1943_v59, 3  ;;  %v620_v22 = vsel %vm614_vm7, %v607_v13, 920167782  ;;  %v623_v11 = vsel %vm611_vm3, %v601_v47, %v604_v32 }
  0xef   :  { %v1358_v20 = vadd.s32 4294967294, %v235_v16  ;;  %vm467_vm13 = vcmp.lt.s32.totalorder %v1933_v49, 2  ;;  %vm1089_vm14 = vcmp.lt.s32.totalorder %v1935_v52, 2  ;;  %v616_v28 = vsel %vm614_vm7, %v604_v32, 2102212464 }
  0xf0   :  { %v621_v23 = vsel %vm613_vm11, %v604_v32, %v620_v22  ;;  %v624_v37 = vsel %vm614_vm7, %v610_v43, 1326507024  ;;  %v1368_v33 = vadd.s32 4294967169, %v480_v15  ;;  %vm465_vm15 = vweird.f32 %v1574_v18 }
  0xf1   :  { %vm1359_vm1 = vcmp.lt.s32.totalorder %v1358_v20, 0  ;;  %v595_v36 = vshrl.u32 %v1510_v40, %v594_v12  ;;  %v622_v27 = vsel %vm612_vm6, %v619_v34, %v621_v23  ;;  %v625_v29 = vsel %vm613_vm11, %v607_v13, %v624_v37 }
  0xf2   :  { %v238_v41 = vsel %vm1359_vm1, 0, %v1358_v20  ;;  %v626_v45 = vsel %vm612_vm6, %v623_v11, %v625_v29  ;;  %v1998_v30 = vmul.u32.u64.low %v1964_v17, %v622_v27  ;;  %v1999_v8 = vmul.u32.u64.high %v1964_v17, %v622_v27, %v1998_v30 }
  0xf3   :  { %v239_v61 = vsub.s32 32, %v238_v41  ;;  %v243_v10 = vsub.s32 4294967266, %v238_v41  ;;  %v615_v12 = vsel %vm611_vm3, %v595_v36, %v598_v4  ;;  %v617_v14 = vsel %vm613_vm11, %v601_v47, %v616_v28 }
  0xf4   :  { %v254_v55 = vsel %vm169_vm0, %v253_v19, %v1931_v26  ;;  %v2010_v38 = vmul.u32.u64.low %v1964_v17, %v626_v45  ;;  %v2011_v58 = vmul.u32.u64.high %v1964_v17, %v626_v45, %v2010_v38  ;;  %v486_v60 = vadd.s32 1, %v1368_v33 }
  0xf5   :  { %v1446_v42 = vpop.eup %1445  ;;  %v240_v1 = vshll.u32 %v1941_v7, %v238_v41  ;;  %v241_v53 = vshrl.u32 %v223_v39, %v239_v61  ;;  %v244_v24 = vadd.s32 127, %v243_v10  ;;  %v618_v56 = vsel %vm612_vm6, %v615_v12, %v617_v14 }
  0xf6   :  { %v1448_v63 = vpop.eup %1447  ;;  %v472_v62 = vxor.u32 2147483648, %v1446_v42  ;;  %v637_v51 = vadd.s32 1, %v1999_v8  ;;  %vm487_vm2 = vcmp.gt.s32.totalorder %v486_v60, 0  ;;  %v256_v59 = vsel %vm1978_vm10, 0, %v254_v55 }
  0xf7   :  { %v469_v54 = vxor.u32 2147483648, %v1448_v63  ;;  %v242_v3 = vor.u32 %v241_v53, %v240_v1  ;;  %v245_v4 = vshll.u32 %v244_v24, 23  ;;  %vm636_vm3 = vc.u32 %v2011_v58, %v1998_v30 }
  0xf8   :  { %v473_v26 = vsel %vm471_vm4, %v472_v62, %v1448_v63  ;;  %v1095_v25 = vsel %vm1093_vm5, %v472_v62, %v1448_v63  ;;  %v634_v13 = vmul.u32 %v1964_v17, %v618_v56  ;;  %v638_v15 = vsel %vm636_vm3, %v637_v51, %v1999_v8 }
  0xf9   :  { %v470_v7 = vsel %vm468_vm8, %v1446_v42, %v469_v54  ;;  %v1092_v47 = vsel %vm1090_vm9, %v1446_v42, %v469_v54  ;;  %v246_v32 = vor.u32 4788187, %v245_v4  ;;  %v488_v16 = vsel %vm487_vm2, %v486_v60, 0 }
  0xfa   :  { %v474_v5 = vsel %vm467_vm13, %v470_v7, %v473_v26  ;;  %v1096_v9 = vsel %vm1089_vm14, %v1092_v47, %v1095_v25  ;;  %v249_v52 = vcvt.s32.f32 %v242_v3  ;;  %v639_v19 = vadd.s32 %v638_v15, %v634_v13 }
  0xfb   :  { %v475_v39 = vsel %vm465_vm15, nan, %v474_v5  ;;  %v1097_v43 = vsel %vm465_vm15, nan, %v1096_v9  ;;  %v247_v49 = vand.u32 2147483647, %v246_v32  ;;  %v490_v34 = vand.u32 31, %v488_v16 }
  0xfc   :  { %1310 = vst.msk [vmem:[#allocation2 + $0x18] sm:$0xff] %vm1306_vm12, %v475_v39  ;;  %1316 = vst.msk [vmem:[#allocation4 + $0x18] sm:$0xff] %vm1306_vm12, %v1097_v43  ;;  %v640_v17 = vadd.s32 536870912, %v639_v19  ;;  %v2042_v11 = vand.u32 3, %v256_v59  ;;  %v483_v18 = vand.u32 8388607, %v476_v35  ;;  %vm259_vm8 = vweird.f32 %v1650_v6 }
  0xfd   :  { %v250_v20 = vmul.f32 %v249_v52, %v247_v49  ;;  %v491_v22 = vsub.s32 32, %v490_v34  ;;  %v879_v23 = vadd.s32 3, %v256_v59  ;;  %v2049_v36 = vshrl.u32 %v488_v16, 5 }
  0xfe   :  { %v2046_v37 = vshrl.u32 %v640_v17, 30  ;;  %v493_v61 = vshll.u32 %v1510_v40, %v490_v34  ;;  %v496_v14 = vshll.u32 %v1511_v44, %v490_v34  ;;  %v499_v42 = vshll.u32 %v1512_v46, %v490_v34 }
  0xff   :  { %v251_v28 = vxor.u32 2147483648, %v250_v20  ;;  %v494_v33 = vshrl.u32 %v1511_v44, %v491_v22  ;;  %v497_v27 = vshrl.u32 %v1512_v46, %v491_v22  ;;  %v500_v29 = vshrl.u32 %v1513_v48, %v491_v22 }
 0x100   :  { %v503_v41 = vshrl.u32 %v1514_v50, %v491_v22  ;;  %v642_v8 = vshll.u32 %v2046_v37, 30  ;;  %v506_v10 = vshrl.u32 %v1515_v57, %v491_v22  ;;  %v502_v55 = vshll.u32 %v1513_v48, %v490_v34 }
 0x101   :  { %v252_v45 = vsel %vm169_vm0, %v251_v28, %v250_v20  ;;  %v495_v60 = vor.u32 %v494_v33, %v493_v61  ;;  %v505_v63 = vshll.u32 %v1514_v50, %v490_v34  ;;  %v498_v62 = vor.u32 %v497_v27, %v496_v14 }
 0x102   :  { %v255_v12 = vsel %vm1978_vm10, %v1650_v6, %v252_v45  ;;  %v2065_v38 = vsub.s32 %v639_v19, %v642_v8  ;;  %v501_v1 = vor.u32 %v500_v29, %v499_v42  ;;  %v504_v57 = vor.u32 %v503_v41, %v502_v55 }
 0x103   :  { %1449 = vcosq.f32 %v255_v12  ;;  %v507_v2 = vor.u32 %v506_v10, %v505_v63  ;;  %v880_v24 = vand.u32 3, %v879_v23  ;;  %v484_v54 = vor.u32 8388608, %v483_v18 }
 0x104   :  { %1451 = vsinq.f32 %v255_v12  ;;  %v645_v53 = vsub.s32 0, %v2065_v38  ;;  %v492_v46 = vshrl.u32 %v1510_v40, %v491_v22  ;;  %vm508_vm0 = vcmp.lt.s32.totalorder %v2049_v36, 1 }
 0x105   :  { %vm511_vm4 = vcmp.lt.s32.totalorder %v2049_v36, 4  ;;  %vm262_vm5 = vcmp.eq.s32.totalorder %v2042_v11, 0  ;;  %vm510_vm6 = vcmp.lt.s32.totalorder %v2049_v36, 3  ;;  %v516_v48 = vsel %vm508_vm0, %v495_v60, %v498_v62 }
 0x106   :  { %v1373_v44 = vmin.u32 %v645_v53, %v2065_v38  ;;  %v517_v50 = vsel %vm511_vm4, %v504_v57, 920167782  ;;  %v520_v56 = vsel %vm508_vm0, %v498_v62, %v501_v1  ;;  %vm261_vm7 = vcmp.lt.s32.totalorder %v2042_v11, 2 }
 0x107   :  { %v513_v26 = vsel %vm511_vm4, %v501_v1, 2102212464  ;;  %v518_v40 = vsel %vm510_vm6, %v501_v1, %v517_v50  ;;  %v521_v25 = vsel %vm511_vm4, %v507_v2, 1326507024  ;;  %vm265_vm9 = vcmp.eq.s32.totalorder %v2042_v11, 2 }
 0x108   :  { %v647_v51 = vclz %v1373_v44  ;;  %vm881_vm10 = vcmp.lt.s32.totalorder %v880_v24, 2  ;;  %vm509_vm11 = vcmp.lt.s32.totalorder %v2049_v36, 2  ;;  %v524_v3 = vshll.u32 %v484_v54, 8 }
 0x109   :  { %v512_v7 = vsel %vm508_vm0, %v492_v46, %v495_v60  ;;  %v519_v47 = vsel %vm509_vm11, %v516_v48, %v518_v40  ;;  %v522_v59 = vsel %vm510_vm6, %v504_v57, %v521_v25  ;;  %v514_v5 = vsel %vm510_vm6, %v498_v62, %v513_v26 }
 0x10a   :  { %v1374_v4 = vadd.s32 4294967294, %v647_v51  ;;  %v523_v9 = vsel %vm509_vm11, %v520_v56, %v522_v59  ;;  %v2095_v32 = vmul.u32.u64.low %v524_v3, %v519_v47  ;;  %v2096_v13 = vmul.u32.u64.high %v524_v3, %v519_v47, %v2095_v32 }
 0x10b   :  { %vm882_vm13 = vcmp.eq.s32.totalorder %v880_v24, 0  ;;  %v2099_v43 = vmul.u32.u64.low %v524_v3, %v523_v9  ;;  %v2100_v15 = vmul.u32.u64.high %v524_v3, %v523_v9, %v2099_v43  ;;  %vm885_vm15 = vcmp.eq.s32.totalorder %v880_v24, 2 }
 0x10c   :  { %vm1375_vm14 = vcmp.lt.s32.totalorder %v1374_v4, 0  ;;  %v635_v52 = vadd.s32 %v1998_v30, %v2011_v58  ;;  %v515_v22 = vsel %vm509_vm11, %v512_v7, %v514_v5  ;;  %v534_v33 = vadd.s32 1, %v2096_v13 }
 0x10d   :  { %v1450_v39 = vpop.eup %1449  ;;  %v650_v19 = vsel %vm1375_vm14, 0, %v1374_v4  ;;  %v531_v45 = vmul.u32 %v524_v3, %v515_v22  ;;  %vm533_vm1 = vc.u32 %v2100_v15, %v2095_v32  ;;  %v665_v63 = vsub.s32 4, %v2046_v37 }
 0x10e   :  { %v1452_v16 = vpop.eup %1451  ;;  %v266_v49 = vxor.u32 2147483648, %v1450_v39  ;;  %v651_v20 = vsub.s32 32, %v650_v19  ;;  %v655_v17 = vsub.s32 4294967266, %v650_v19  ;;  %v652_v23 = vshll.u32 %v2065_v38, %v650_v19 }
 0x10f   :  { %v263_v34 = vxor.u32 2147483648, %v1452_v16  ;;  %v535_v11 = vsel %vm533_vm1, %v534_v33, %v2096_v13  ;;  %vm581_vm2 = vcmp.lt.s32.totalorder %v1772_v21, 0  ;;  %vm580_vm3 = vcmp.le.f32.partialorder %v579_v0, 0.7853982 }
 0x110   :  { %v267_v18 = vsel %vm265_vm9, %v266_v49, %v1452_v16  ;;  %v887_v28 = vsel %vm885_vm15, %v266_v49, %v1452_v16  ;;  %v653_v58 = vshrl.u32 %v635_v52, %v651_v20  ;;  %v656_v29 = vadd.s32 127, %v655_v17 }
 0x111   :  { %v264_v27 = vsel %vm262_vm5, %v1450_v39, %v263_v34  ;;  %v884_v30 = vsel %vm882_vm13, %v1450_v39, %v263_v34  ;;  %v536_v42 = vadd.s32 %v535_v11, %v531_v45  ;;  %v666_v53 = vsel %vm581_vm2, %v665_v63, %v2046_v37 }
 0x112   :  { %v268_v41 = vsel %vm261_vm7, %v264_v27, %v267_v18  ;;  %v888_v36 = vsel %vm881_vm10, %v884_v30, %v887_v28  ;;  %v654_v10 = vor.u32 %v653_v58, %v652_v23  ;;  %v657_v12 = vshll.u32 %v656_v29, 23 }
 0x113   :  { %v269_v8 = vsel %vm259_vm8, nan, %v268_v41  ;;  %v889_v61 = vsel %vm259_vm8, nan, %v888_v36  ;;  %v537_v60 = vadd.s32 536870912, %v536_v42  ;;  %v668_v44 = vsel %vm580_vm3, 0, %v666_v53 }
 0x114   :  { %1308 = vst.msk [vmem:[#allocation2 + $0x8] sm:$0xff] %vm1306_vm12, %v269_v8  ;;  %1314 = vst.msk [vmem:[#allocation4 + $0x8] sm:$0xff] %vm1306_vm12, %v889_v61  ;;  %v658_v14 = vor.u32 4788187, %v657_v12  ;;  %v661_v38 = vcvt.s32.f32 %v654_v10  ;;  %v1295_v50 = vadd.s32 3, %v668_v44  ;;  %v672_v51 = vand.u32 3, %v668_v44 }
 0x115   :  { %v538_v1 = vshrl.u32 %v537_v60, 30  ;;  %v532_v0 = vadd.s32 %v2095_v32, %v2100_v15  ;;  %vm671_vm10 = vweird.f32 %v1772_v21  ;;  %vm478_vm11 = vcmp.lt.s32.totalorder %v1929_v31, 0 }
 0x116   :  { %v659_v55 = vand.u32 2147483647, %v658_v14  ;;  %v1296_v40 = vand.u32 3, %v1295_v50  ;;  %vm673_vm4 = vcmp.lt.s32.totalorder %v672_v51, 2  ;;  %vm674_vm5 = vcmp.eq.s32.totalorder %v672_v51, 0 }
 0x117   :  { %v539_v57 = vshll.u32 %v538_v1, 30  ;;  %vm677_vm6 = vcmp.eq.s32.totalorder %v672_v51, 2  ;;  %v562_v23 = vsub.s32 4, %v538_v1  ;;  %vm477_vm13 = vcmp.le.f32.partialorder %v476_v35, 0.7853982 }
 0x118   :  { %v662_v62 = vmul.f32 %v661_v38, %v659_v55  ;;  %vm1301_vm7 = vcmp.eq.s32.totalorder %v1296_v40, 2  ;;  %vm1297_vm8 = vcmp.lt.s32.totalorder %v1296_v40, 2  ;;  %vm1298_vm9 = vcmp.eq.s32.totalorder %v1296_v40, 0 }
 0x119   :  { %v540_v24 = vsub.s32 %v536_v42, %v539_v57  ;;  %v563_v27 = vsel %vm478_vm11, %v562_v23, %v538_v1 }
 0x11a   :  { %v663_v6 = vxor.u32 2147483648, %v662_v62  ;;  %v565_v58 = vsel %vm477_vm13, 0, %v563_v27 }
 0x11b   :  { %v542_v46 = vsub.s32 0, %v540_v24  ;;  %v1191_v29 = vadd.s32 3, %v565_v58  ;;  %v569_v41 = vand.u32 3, %v565_v58 }
 0x11c   :  { %v664_v2 = vsel %vm581_vm2, %v663_v6, %v662_v62 }
 0x11d   :  { %v667_v54 = vsel %vm580_vm3, %v1772_v21, %v664_v2  ;;  %v1369_v48 = vmin.u32 %v542_v46, %v540_v24  ;;  %v1192_v36 = vand.u32 3, %v1191_v29  ;;  %vm574_vm14 = vcmp.eq.s32.totalorder %v569_v41, 2 }
 0x11e   :  { %1453 = vcosq.f32 %v667_v54  ;;  %vm571_vm1 = vcmp.eq.s32.totalorder %v569_v41, 0  ;;  %vm570_vm3 = vcmp.lt.s32.totalorder %v569_v41, 2 }
 0x11f   :  { %1455 = vsinq.f32 %v667_v54  ;;  %v544_v56 = vclz %v1369_v48  ;;  %vm1197_vm15 = vcmp.eq.s32.totalorder %v1192_v36, 2  ;;  %vm1194_vm2 = vcmp.eq.s32.totalorder %v1192_v36, 0 }
 0x121   :  { %v1370_v26 = vadd.s32 4294967294, %v544_v56 }
 0x123   :  { %vm1371_vm0 = vcmp.lt.s32.totalorder %v1370_v26, 0 }
 0x124   :  { %v547_v25 = vsel %vm1371_vm0, 0, %v1370_v26  ;;  %vm1193_vm0 = vcmp.lt.s32.totalorder %v1192_v36, 2 }
 0x125   :  { %v548_v3 = vsub.s32 32, %v547_v25  ;;  %v552_v4 = vsub.s32 4294967266, %v547_v25  ;;  %v549_v5 = vshll.u32 %v540_v24, %v547_v25 }
 0x127   :  { %v550_v9 = vshrl.u32 %v532_v0, %v548_v3  ;;  %v553_v13 = vadd.s32 127, %v552_v4 }
 0x128   :  { %v1454_v37 = vpop.eup %1453 }
 0x129   :  { %v1456_v7 = vpop.eup %1455  ;;  %v678_v47 = vxor.u32 2147483648, %v1454_v37  ;;  %v551_v52 = vor.u32 %v550_v9, %v549_v5  ;;  %v554_v19 = vshll.u32 %v553_v13, 23 }
 0x12a   :  { %v675_v59 = vxor.u32 2147483648, %v1456_v7 }
 0x12b   :  { %v679_v39 = vsel %vm677_vm6, %v678_v47, %v1456_v7  ;;  %v1303_v43 = vsel %vm1301_vm7, %v678_v47, %v1456_v7  ;;  %v555_v17 = vor.u32 4788187, %v554_v19  ;;  %v558_v18 = vcvt.s32.f32 %v551_v52 }
 0x12c   :  { %v676_v16 = vsel %vm674_vm5, %v1454_v37, %v675_v59  ;;  %v1300_v49 = vsel %vm1298_vm9, %v1454_v37, %v675_v59 }
 0x12d   :  { %v680_v32 = vsel %vm673_vm4, %v676_v16, %v679_v39  ;;  %v1304_v15 = vsel %vm1297_vm8, %v1300_v49, %v1303_v43  ;;  %v556_v22 = vand.u32 2147483647, %v555_v17  ;;  %vm568_vm4 = vweird.f32 %v1929_v31 }
 0x12e   :  { %v681_v34 = vsel %vm671_vm10, nan, %v680_v32  ;;  %v1305_v20 = vsel %vm671_vm10, nan, %v1304_v15 }
 0x12f   :  { %1312 = vst.msk [vmem:[#allocation2 + $0x28] sm:$0xff] %vm1306_vm12, %v681_v34  ;;  %1318 = vst.msk [vmem:[#allocation4 + $0x28] sm:$0xff] %vm1306_vm12, %v1305_v20  ;;  %v559_v28 = vmul.f32 %v558_v18, %v556_v22 }
 0x131   :  { %v560_v33 = vxor.u32 2147483648, %v559_v28 }
 0x133   :  { %v561_v21 = vsel %vm478_vm11, %v560_v33, %v559_v28 }
 0x134   :  { %v564_v30 = vsel %vm477_vm13, %v1929_v31, %v561_v21 }
 0x135   :  { %1457 = vcosq.f32 %v564_v30 }
 0x136   :  { %1459 = vsinq.f32 %v564_v30 }
 0x13f   :  { %v1458_v45 = vpop.eup %1457 }
 0x140   :  { %v1460_v8 = vpop.eup %1459  ;;  %v575_v61 = vxor.u32 2147483648, %v1458_v45 }
 0x141   :  { %v572_v10 = vxor.u32 2147483648, %v1460_v8 }
 0x142   :  { %v576_v35 = vsel %vm574_vm14, %v575_v61, %v1460_v8  ;;  %v1199_v12 = vsel %vm1197_vm15, %v575_v61, %v1460_v8 }
 0x143   :  { %v573_v11 = vsel %vm571_vm1, %v1458_v45, %v572_v10  ;;  %v1196_v14 = vsel %vm1194_vm2, %v1458_v45, %v572_v10 }
 0x144   :  { %v577_v42 = vsel %vm570_vm3, %v573_v11, %v576_v35  ;;  %v1200_v55 = vsel %vm1193_vm0, %v1196_v14, %v1199_v12 }
 0x145   :  { %v578_v38 = vsel %vm568_vm4, nan, %v577_v42  ;;  %v1201_v60 = vsel %vm568_vm4, nan, %v1200_v55 }
 0x146   :  { %1311 = vst.msk [vmem:[#allocation2 + $0x20] sm:$0xff] %vm1306_vm12, %v578_v38  ;;  %1317 = vst.msk [vmem:[#allocation4 + $0x20] sm:$0xff] %vm1306_vm12, %v1201_v60 }
 0x147   :  { %1472 = shalt.err (!%p1469_p4)
}
 0x148   :  { %s1473_s4 = scalar_lea.hbm %s2177_s2, 768 }
 0x149   :  { %p1474_p5 = scmp.ne.s32.totalorder %s2177_s2, %s1473_s4  ;;  %p1477_p6 = scmp.lt.u32.totalorder %s1473_s4, %s2177_s2 }
 0x14b   :  { %p1479_p7 = pnand %p1477_p6, %p1474_p5 }
 0x14d   :  { %1482 = shalt.err (!%p1479_p7)
}
 0x14e   :  { %s1518_s9 = smov 128   ;;  %s1519_s10 = smov 8  }
 0x14f   :  { %1330 = dma.vmem_to_hbm [thread:$0]  %s1325_s1, 768, %s2177_s2, [#allocation3], %s1518_s9, %s1518_s9, %s1519_s10  }
 0x150   :  { %s1483_s13 = scalar_lea.vmem %s2142_s27, 768  ;;  %p1488_p9 = scmp.lt.s32.totalorder %s2142_s27, %s2142_s27 }
 0x151   :  { %p1484_p8 = scmp.ne.s32.totalorder %s2142_s27, %s1483_s13  ;;  %p1489_p10 = scmp.lt.s32.totalorder %s1483_s13, %s1483_s13 }
 0x153   :  { %p1490_p11 = por %p1489_p10, %p1488_p9 }
 0x155   :  { %p1491_p12 = pnand %p1490_p11, %p1484_p8 }
 0x157   :  { %1494 = shalt.err (!%p1491_p12)
}
 0x158   :  { %s1495_s16 = scalar_lea.hbm %s2178_s3, 768 }
 0x159   :  { %p1496_p13 = scmp.ne.s32.totalorder %s2178_s3, %s1495_s16  ;;  %p1499_p0 = scmp.lt.u32.totalorder %s1495_s16, %s2178_s3 }
 0x15b   :  { %p1501_p1 = pnand %p1499_p0, %p1496_p13 }
 0x15d   :  { %1504 = shalt.err (!%p1501_p1)
}
 0x15e   :  { %1342 = dma.vmem_to_hbm [thread:$0]  %s2142_s27, 768, %s2178_s3, [#allocation5], %s1518_s9, %s1518_s9, %s1519_s10  }
 0x15f   :  { %1505 = dma.done.wait [#allocation3], 768  }
 0x160   :  { %1506 = vsyncadd [#allocation3], 4294966528 }
 0x161   :  { %1507 = dma.done.wait [#allocation5], 768  }
 0x162   :  { %1508 = vsyncadd [#allocation5], 4294966528 }
 0x163   :  { %1349 = vsyncpa [#allocation3], 1 }
 0x164   :  { %1350 = vsyncpa [#allocation5], 1 }

</bundles_post_ra>
